<compile_context>
chip_gen: v7x
topology: tpu7x:2x2x1
jax: 0.10.0
libtpu: 0.0.40
codegen_flags: <defaults>
</compile_context>

<pallas_src>
import functools

import jax
import jax.numpy as jnp
from jax import lax
from jax.experimental import pallas as pl
from jax.experimental.pallas import tpu as pltpu


def _round_up(n, m):
    return ((n + m - 1) // m) * m


def lstm_kernel(x_ref, wih_ref, whh_ref, b_ref, wlin_ref, blin_ref, out_ref, gx_ref):
    """Whole forward pass in one invocation.

    x_ref    : (T, Bp, I)   bf16, time-major, zero-padded batch
    wih_ref  : (I,  4H)     bf16, W_ih^T, gate columns [i|f|g|o] (natural layout)
    whh_ref  : (H,  4H)     bf16, W_hh^T, same column layout
    b_ref    : (1,  4H)     f32,  b_ih + b_hh
    wlin_ref : (H,  Op)     bf16, W_lin^T, zero-padded columns
    blin_ref : (1,  Op)     f32,  linear bias, zero-padded
    out_ref  : (Bp, Op)     f32,  logits of the last timestep (padded)
    gx_ref   : (T*Bp, 4H)   f32 VMEM scratch: hoisted input projection
    """
    T, Bp, I = x_ref.shape
    H = whh_ref.shape[0]

    # Hoisted input projection for ALL timesteps at once: ONE MXU matmul.
    # (T,Bp,I)->(T*Bp,I) is a free leading-dim merge (last dim unchanged).
    x2 = x_ref[...].reshape(T * Bp, I)
    gx_ref[...] = (
        jnp.dot(x2, wih_ref[...], preferred_element_type=jnp.float32) + b_ref[...]
    )

    # Packed W_hh^T is only (H, 4H) = (32, 128) bf16 (~2 vregs) — cheap to keep live.
    whh = whh_ref[...]

    h = jnp.zeros((Bp, H), jnp.float32)
    c = jnp.zeros((Bp, H), jnp.float32)

    # Recurrent loop. T is a static Python int -> full unroll. Only the small
    # (Bp,H)x(H,4H) matmul is on the serial critical path; gate math is f32 VPU/EUP.
    for t in range(T):
        g = gx_ref[t * Bp:(t + 1) * Bp, :] + jnp.dot(
            h.astype(whh.dtype), whh, preferred_element_type=jnp.float32
        )  # (Bp, 4H) == one 128-lane vreg, gates [i|f|g|o]
        i_g = jax.nn.sigmoid(g[:, 0 * H:1 * H])
        f_g = jax.nn.sigmoid(g[:, 1 * H:2 * H])
        g_g = jnp.tanh(g[:, 2 * H:3 * H])
        o_g = jax.nn.sigmoid(g[:, 3 * H:4 * H])
        c = f_g * c + i_g * g_g
        h = o_g * jnp.tanh(c)

    # Fused final linear on the last hidden state; lane-dense (Bp, Op) store.
    logits = jnp.dot(h.astype(wlin_ref.dtype), wlin_ref[...],
                     preferred_element_type=jnp.float32) + blin_ref[...]
    out_ref[...] = logits.astype(out_ref.dtype)


def prepare_params(w_ih_T, w_hh_T, b_ih, b_hh, w_lin_T, b_lin,
                   compute_dtype=jnp.bfloat16):
    """One-time (model-load) parameter preparation — NOT on the per-call hot path.

    w_ih_T: (I, 4H)  w_hh_T: (H, 4H)  b_ih/b_hh: (4H,)  w_lin_T: (H, O)  b_lin: (O,)
    """
    H = w_hh_T.shape[0]
    O = w_lin_T.shape[1]
    Op = _round_up(O, 128)  # lane-dense output store
    f32 = jnp.float32
    return {
        # Packed-gate layout is PyTorch's natural [i|f|g|o] column order: no padding.
        "wih": w_ih_T.astype(compute_dtype),                       # (I, 4H)
        "whh": w_hh_T.astype(compute_dtype),                       # (H, 4H)
        "b": (b_ih + b_hh).reshape(1, 4 * H).astype(f32),          # (1, 4H)
        "wlin": jnp.zeros((H, Op), compute_dtype)
                   .at[:, :O].set(w_lin_T.astype(compute_dtype)),  # (H, Op)
        "blin": jnp.zeros((1, Op), f32)
                   .at[:, :O].set(b_lin.reshape(1, O).astype(f32)),  # (1, Op)
    }


@functools.partial(jax.jit, static_argnames=("output_size",))
def classification_lstm_forward(x, params, *, output_size):
    """x: (B, T, I) f32; params from prepare_params. Returns (B, output_size) logits."""
    wih, whh, b = params["wih"], params["whh"], params["b"]
    wlin, blin = params["wlin"], params["blin"]

    B, T, I = x.shape
    H, H4 = whh.shape
    Op = wlin.shape[1]
    Bp = _round_up(B, 8)  # sublane multiple; padded rows never mix into real rows
    # TODO(synk): MXU is under-filled at M=Bp=8; if real deployments batch more
    # sequences, raise Bp toward 128/256 and (on v7x) add a leading "parallel"
    # batch grid axis so both TensorCores are used.

    cdt = wih.dtype
    # Batch-pad + go time-major under the SAME jit as the kernel call (tiny: T*Bp*I).
    x_p = jnp.zeros((Bp, T, I), cdt).at[:B].set(x.astype(cdt))
    x_tm = jnp.swapaxes(x_p, 0, 1)  # (T, Bp, I)

    out_p = pl.pallas_call(
        lstm_kernel,
        out_shape=jax.ShapeDtypeStruct((Bp, Op), jnp.float32),
        grid_spec=pltpu.PrefetchScalarGridSpec(
            num_scalar_prefetch=0,
            grid=(1,),  # single invocation: everything resident in VMEM (~50 KiB)
            in_specs=[
                pl.BlockSpec((T, Bp, I), lambda i: (0, 0, 0)),   # whole sequence
                pl.BlockSpec((I, H4), lambda i: (0, 0)),         # W_ih^T
                pl.BlockSpec((H, H4), lambda i: (0, 0)),         # W_hh^T
                pl.BlockSpec((1, H4), lambda i: (0, 0)),         # b_ih + b_hh
                pl.BlockSpec((H, Op), lambda i: (0, 0)),         # W_lin^T (padded)
                pl.BlockSpec((1, Op), lambda i: (0, 0)),         # b_lin (padded)
            ],
            out_specs=pl.BlockSpec((Bp, Op), lambda i: (0, 0)),  # lane-dense logits
            scratch_shapes=[pltpu.VMEM((T * Bp, H4), jnp.float32)],  # hoisted gx
        ),
        compiler_params=pltpu.CompilerParams(
            dimension_semantics=("arbitrary",)),
    )(x_tm, wih, whh, b, wlin, blin)

    return out_p[:B, :output_size]


def reference_forward(x, w_ih_T, w_hh_T, bias, w_lin_T, b_lin):
    """Pure-JAX f32 reference of the same forward pass (for validation)."""
    B, T, I = x.shape
    H = w_hh_T.shape[0]

    def step(carry, x_t):
        h, c = carry
        gates = x_t @ w_ih_T + h @ w_hh_T + bias
        i_g = jax.nn.sigmoid(gates[:, 0 * H:1 * H])
        f_g = jax.nn.sigmoid(gates[:, 1 * H:2 * H])
        g_g = jnp.tanh(gates[:, 2 * H:3 * H])
        o_g = jax.nn.sigmoid(gates[:, 3 * H:4 * H])
        c = f_g * c + i_g * g_g
        h = o_g * jnp.tanh(c)
        return (h, c), None

    h0 = jnp.zeros((B, H), jnp.float32)
    c0 = jnp.zeros((B, H), jnp.float32)
    (h_last, _), _ = lax.scan(step, (h0, c0), jnp.swapaxes(x, 0, 1))
    return h_last @ w_lin_T + b_lin


if __name__ == "__main__":
    # Small shapes consistent with the module's forward:
    #   x: (batch=2, seq=8, input_size=16), hidden_size=32, output_size=5
    B, T, I, H, O = 2, 8, 16, 32, 5

    key = jax.random.PRNGKey(0)
    k_x, k1, k2, k3, k4, k5, k6 = jax.random.split(key, 7)

    scale = 1.0 / (H ** 0.5)  # matches PyTorch's uniform(-1/sqrt(H), 1/sqrt(H))
    x = jax.random.normal(k_x, (B, T, I), jnp.float32)

    # LSTM params (stored pre-transposed): W_ih (4H, I) -> (I, 4H), etc.
    w_ih_T = jax.random.uniform(k1, (I, 4 * H), jnp.float32, -scale, scale)
    w_hh_T = jax.random.uniform(k2, (H, 4 * H), jnp.float32, -scale, scale)
    b_ih = jax.random.uniform(k3, (4 * H,), jnp.float32, -scale, scale)
    b_hh = jax.random.uniform(k4, (4 * H,), jnp.float32, -scale, scale)

    # Linear params: W (O, H) -> transposed (H, O), b (O,)
    w_lin_T = jax.random.uniform(k5, (H, O), jnp.float32, -scale, scale)
    b_lin = jax.random.uniform(k6, (O,), jnp.float32, -scale, scale)

    # One-time parameter prep (hoisted off the per-call hot path).
    params = prepare_params(w_ih_T, w_hh_T, b_ih, b_hh, w_lin_T, b_lin)
    params = jax.tree_util.tree_map(jax.block_until_ready, params)

    out = classification_lstm_forward(x, params, output_size=O)
    out = jax.block_until_ready(out)

    ref = reference_forward(x, w_ih_T, w_hh_T, b_ih + b_hh, w_lin_T, b_lin)
    assert out.shape == (B, O)
    # bf16 MXU operands (f32 accumulation / f32 state) -> ~1e-2 level agreement.
    assert jnp.allclose(out, ref, atol=2e-2, rtol=2e-2), "mismatch vs reference"

    print("KERNEL_OK")
</pallas_src>

<mosaic_0001>
module attributes {stable_mosaic.version = 11 : i64} {
  func.func @lstm_kernel(%arg0: i32, %arg1: memref<8x8x16xbf16, #tpu.memory_space<vmem>>, %arg2: memref<16x128xbf16, #tpu.memory_space<vmem>>, %arg3: memref<32x128xbf16, #tpu.memory_space<vmem>>, %arg4: memref<1x128xf32, #tpu.memory_space<vmem>>, %arg5: memref<32x128xbf16, #tpu.memory_space<vmem>>, %arg6: memref<1x128xf32, #tpu.memory_space<vmem>>, %arg7: memref<8x128xf32, #tpu.memory_space<vmem>>, %arg8: memref<64x128xf32, #tpu.memory_space<vmem>>) attributes {dimension_semantics = [#tpu.dimension_semantics<arbitrary>], iteration_bounds = array<i64: 1>, scalar_prefetch = 0 : i64, scratch_operands = 1 : i64, tpu.core_type = #tpu.core_type<tc>, window_params = [{pipeline_mode = #tpu.pipeline_mode<synchronous>, transform_indices = @transform_0, window_bounds = array<i64: 8, 8, 16>}, {pipeline_mode = #tpu.pipeline_mode<synchronous>, transform_indices = @transform_1, window_bounds = array<i64: 16, 128>}, {pipeline_mode = #tpu.pipeline_mode<synchronous>, transform_indices = @transform_2, window_bounds = array<i64: 32, 128>}, {pipeline_mode = #tpu.pipeline_mode<synchronous>, transform_indices = @transform_3, window_bounds = array<i64: 1, 128>}, {pipeline_mode = #tpu.pipeline_mode<synchronous>, transform_indices = @transform_4, window_bounds = array<i64: 32, 128>}, {pipeline_mode = #tpu.pipeline_mode<synchronous>, transform_indices = @transform_5, window_bounds = array<i64: 1, 128>}, {pipeline_mode = #tpu.pipeline_mode<synchronous>, transform_indices = @transform_6, window_bounds = array<i64: 8, 128>}]} {
    %c0 = arith.constant 0 : index
    %c0_0 = arith.constant 0 : index
    %c0_1 = arith.constant 0 : index
    %0 = vector.load %arg1[%c0, %c0_0, %c0_1] : memref<8x8x16xbf16, #tpu.memory_space<vmem>>, vector<8x8x16xbf16>
    %1 = vector.shape_cast %0 : vector<8x8x16xbf16> to vector<64x16xbf16>
    %c0_2 = arith.constant 0 : index
    %c0_3 = arith.constant 0 : index
    %2 = vector.load %arg2[%c0_2, %c0_3] : memref<16x128xbf16, #tpu.memory_space<vmem>>, vector<16x128xbf16>
    %cst = arith.constant dense<0.000000e+00> : vector<64x128xf32>
    %3 = tpu.matmul %1, %2, %cst {dimension_numbers = #tpu.dot_dimension_numbers<[1], [0], [0], [1], [0, 0, 1, 1], [], []>} : vector<64x16xbf16>, vector<16x128xbf16>, vector<64x128xf32> -> vector<64x128xf32>
    %c0_4 = arith.constant 0 : index
    %c0_5 = arith.constant 0 : index
    %4 = vector.load %arg4[%c0_4, %c0_5] : memref<1x128xf32, #tpu.memory_space<vmem>>, vector<1x128xf32>
    %5 = vector.broadcast %4 : vector<1x128xf32> to vector<64x128xf32>
    %6 = arith.addf %3, %5 : vector<64x128xf32>
    %c0_6 = arith.constant 0 : index
    %c0_7 = arith.constant 0 : index
    %7 = vector.load %arg8[%c0_6, %c0_7] : memref<64x128xf32, #tpu.memory_space<vmem>>, vector<64x128xf32>
    tpu.vector_store %arg8[%c0_6, %c0_7], %6 {strides = array<i32>} : memref<64x128xf32, #tpu.memory_space<vmem>>, vector<64x128xf32>,
    %c0_8 = arith.constant 0 : index
    %c0_9 = arith.constant 0 : index
    %8 = vector.load %arg3[%c0_8, %c0_9] : memref<32x128xbf16, #tpu.memory_space<vmem>>, vector<32x128xbf16>
    %cst_10 = arith.constant 0.000000e+00 : f32
    %9 = vector.broadcast %cst_10 : f32 to vector<8x32xf32>
    %cst_11 = arith.constant 0.000000e+00 : f32
    %10 = vector.broadcast %cst_11 : f32 to vector<8x32xf32>
    %c0_12 = arith.constant 0 : index
    %c0_13 = arith.constant 0 : index
    %11 = vector.load %arg8[%c0_12, %c0_13] : memref<64x128xf32, #tpu.memory_space<vmem>>, vector<8x128xf32>
    %12 = arith.truncf %9 : vector<8x32xf32> to vector<8x32xbf16>
    %cst_14 = arith.constant dense<0.000000e+00> : vector<8x128xf32>
    %13 = tpu.matmul %12, %8, %cst_14 {dimension_numbers = #tpu.dot_dimension_numbers<[1], [0], [0], [1], [0, 0, 1, 1], [], []>} : vector<8x32xbf16>, vector<32x128xbf16>, vector<8x128xf32> -> vector<8x128xf32>
    %14 = arith.addf %11, %13 : vector<8x128xf32>
    %15 = vector.extract_strided_slice %14 {offsets = [0, 0], sizes = [8, 32], strides = [1, 1]} : vector<8x128xf32> to vector<8x32xf32>
    %16 = arith.negf %15 : vector<8x32xf32>
    %17 = math.exp %16 : vector<8x32xf32>
    %cst_15 = arith.constant 1.000000e+00 : f32
    %18 = vector.broadcast %cst_15 : f32 to vector<8x32xf32>
    %19 = arith.addf %18, %17 : vector<8x32xf32>
    %20 = arith.divf %18, %19 : vector<8x32xf32>
    %21 = vector.extract_strided_slice %14 {offsets = [0, 32], sizes = [8, 32], strides = [1, 1]} : vector<8x128xf32> to vector<8x32xf32>
    %22 = arith.negf %21 : vector<8x32xf32>
    %23 = math.exp %22 : vector<8x32xf32>
    %cst_16 = arith.constant 1.000000e+00 : f32
    %24 = vector.broadcast %cst_16 : f32 to vector<8x32xf32>
    %25 = arith.addf %24, %23 : vector<8x32xf32>
    %26 = arith.divf %24, %25 : vector<8x32xf32>
    %27 = vector.extract_strided_slice %14 {offsets = [0, 64], sizes = [8, 32], strides = [1, 1]} : vector<8x128xf32> to vector<8x32xf32>
    %28 = math.tanh %27 : vector<8x32xf32>
    %29 = vector.extract_strided_slice %14 {offsets = [0, 96], sizes = [8, 32], strides = [1, 1]} : vector<8x128xf32> to vector<8x32xf32>
    %30 = arith.negf %29 : vector<8x32xf32>
    %31 = math.exp %30 : vector<8x32xf32>
    %cst_17 = arith.constant 1.000000e+00 : f32
    %32 = vector.broadcast %cst_17 : f32 to vector<8x32xf32>
    %33 = arith.addf %32, %31 : vector<8x32xf32>
    %34 = arith.divf %32, %33 : vector<8x32xf32>
    %35 = arith.mulf %26, %10 : vector<8x32xf32>
    %36 = arith.mulf %20, %28 : vector<8x32xf32>
    %37 = arith.addf %35, %36 : vector<8x32xf32>
    %38 = math.tanh %37 : vector<8x32xf32>
    %39 = arith.mulf %34, %38 : vector<8x32xf32>
    %c8 = arith.constant 8 : index
    %c0_18 = arith.constant 0 : index
    %40 = vector.load %arg8[%c8, %c0_18] : memref<64x128xf32, #tpu.memory_space<vmem>>, vector<8x128xf32>
    %41 = arith.truncf %39 : vector<8x32xf32> to vector<8x32xbf16>
    %cst_19 = arith.constant dense<0.000000e+00> : vector<8x128xf32>
    %42 = tpu.matmul %41, %8, %cst_19 {dimension_numbers = #tpu.dot_dimension_numbers<[1], [0], [0], [1], [0, 0, 1, 1], [], []>} : vector<8x32xbf16>, vector<32x128xbf16>, vector<8x128xf32> -> vector<8x128xf32>
    %43 = arith.addf %40, %42 : vector<8x128xf32>
    %44 = vector.extract_strided_slice %43 {offsets = [0, 0], sizes = [8, 32], strides = [1, 1]} : vector<8x128xf32> to vector<8x32xf32>
    %45 = arith.negf %44 : vector<8x32xf32>
    %46 = math.exp %45 : vector<8x32xf32>
    %cst_20 = arith.constant 1.000000e+00 : f32
    %47 = vector.broadcast %cst_20 : f32 to vector<8x32xf32>
    %48 = arith.addf %47, %46 : vector<8x32xf32>
    %49 = arith.divf %47, %48 : vector<8x32xf32>
    %50 = vector.extract_strided_slice %43 {offsets = [0, 32], sizes = [8, 32], strides = [1, 1]} : vector<8x128xf32> to vector<8x32xf32>
    %51 = arith.negf %50 : vector<8x32xf32>
    %52 = math.exp %51 : vector<8x32xf32>
    %cst_21 = arith.constant 1.000000e+00 : f32
    %53 = vector.broadcast %cst_21 : f32 to vector<8x32xf32>
    %54 = arith.addf %53, %52 : vector<8x32xf32>
    %55 = arith.divf %53, %54 : vector<8x32xf32>
    %56 = vector.extract_strided_slice %43 {offsets = [0, 64], sizes = [8, 32], strides = [1, 1]} : vector<8x128xf32> to vector<8x32xf32>
    %57 = math.tanh %56 : vector<8x32xf32>
    %58 = vector.extract_strided_slice %43 {offsets = [0, 96], sizes = [8, 32], strides = [1, 1]} : vector<8x128xf32> to vector<8x32xf32>
    %59 = arith.negf %58 : vector<8x32xf32>
    %60 = math.exp %59 : vector<8x32xf32>
    %cst_22 = arith.constant 1.000000e+00 : f32
    %61 = vector.broadcast %cst_22 : f32 to vector<8x32xf32>
    %62 = arith.addf %61, %60 : vector<8x32xf32>
    %63 = arith.divf %61, %62 : vector<8x32xf32>
    %64 = arith.mulf %55, %37 : vector<8x32xf32>
    %65 = arith.mulf %49, %57 : vector<8x32xf32>
    %66 = arith.addf %64, %65 : vector<8x32xf32>
    %67 = math.tanh %66 : vector<8x32xf32>
    %68 = arith.mulf %63, %67 : vector<8x32xf32>
    %c16 = arith.constant 16 : index
    %c0_23 = arith.constant 0 : index
    %69 = vector.load %arg8[%c16, %c0_23] : memref<64x128xf32, #tpu.memory_space<vmem>>, vector<8x128xf32>
    %70 = arith.truncf %68 : vector<8x32xf32> to vector<8x32xbf16>
    %cst_24 = arith.constant dense<0.000000e+00> : vector<8x128xf32>
    %71 = tpu.matmul %70, %8, %cst_24 {dimension_numbers = #tpu.dot_dimension_numbers<[1], [0], [0], [1], [0, 0, 1, 1], [], []>} : vector<8x32xbf16>, vector<32x128xbf16>, vector<8x128xf32> -> vector<8x128xf32>
    %72 = arith.addf %69, %71 : vector<8x128xf32>
    %73 = vector.extract_strided_slice %72 {offsets = [0, 0], sizes = [8, 32], strides = [1, 1]} : vector<8x128xf32> to vector<8x32xf32>
    %74 = arith.negf %73 : vector<8x32xf32>
    %75 = math.exp %74 : vector<8x32xf32>
    %cst_25 = arith.constant 1.000000e+00 : f32
    %76 = vector.broadcast %cst_25 : f32 to vector<8x32xf32>
    %77 = arith.addf %76, %75 : vector<8x32xf32>
    %78 = arith.divf %76, %77 : vector<8x32xf32>
    %79 = vector.extract_strided_slice %72 {offsets = [0, 32], sizes = [8, 32], strides = [1, 1]} : vector<8x128xf32> to vector<8x32xf32>
    %80 = arith.negf %79 : vector<8x32xf32>
    %81 = math.exp %80 : vector<8x32xf32>
    %cst_26 = arith.constant 1.000000e+00 : f32
    %82 = vector.broadcast %cst_26 : f32 to vector<8x32xf32>
    %83 = arith.addf %82, %81 : vector<8x32xf32>
    %84 = arith.divf %82, %83 : vector<8x32xf32>
    %85 = vector.extract_strided_slice %72 {offsets = [0, 64], sizes = [8, 32], strides = [1, 1]} : vector<8x128xf32> to vector<8x32xf32>
    %86 = math.tanh %85 : vector<8x32xf32>
    %87 = vector.extract_strided_slice %72 {offsets = [0, 96], sizes = [8, 32], strides = [1, 1]} : vector<8x128xf32> to vector<8x32xf32>
    %88 = arith.negf %87 : vector<8x32xf32>
    %89 = math.exp %88 : vector<8x32xf32>
    %cst_27 = arith.constant 1.000000e+00 : f32
    %90 = vector.broadcast %cst_27 : f32 to vector<8x32xf32>
    %91 = arith.addf %90, %89 : vector<8x32xf32>
    %92 = arith.divf %90, %91 : vector<8x32xf32>
    %93 = arith.mulf %84, %66 : vector<8x32xf32>
    %94 = arith.mulf %78, %86 : vector<8x32xf32>
    %95 = arith.addf %93, %94 : vector<8x32xf32>
    %96 = math.tanh %95 : vector<8x32xf32>
    %97 = arith.mulf %92, %96 : vector<8x32xf32>
    %c24 = arith.constant 24 : index
    %c0_28 = arith.constant 0 : index
    %98 = vector.load %arg8[%c24, %c0_28] : memref<64x128xf32, #tpu.memory_space<vmem>>, vector<8x128xf32>
    %99 = arith.truncf %97 : vector<8x32xf32> to vector<8x32xbf16>
    %cst_29 = arith.constant dense<0.000000e+00> : vector<8x128xf32>
    %100 = tpu.matmul %99, %8, %cst_29 {dimension_numbers = #tpu.dot_dimension_numbers<[1], [0], [0], [1], [0, 0, 1, 1], [], []>} : vector<8x32xbf16>, vector<32x128xbf16>, vector<8x128xf32> -> vector<8x128xf32>
    %101 = arith.addf %98, %100 : vector<8x128xf32>
    %102 = vector.extract_strided_slice %101 {offsets = [0, 0], sizes = [8, 32], strides = [1, 1]} : vector<8x128xf32> to vector<8x32xf32>
    %103 = arith.negf %102 : vector<8x32xf32>
    %104 = math.exp %103 : vector<8x32xf32>
    %cst_30 = arith.constant 1.000000e+00 : f32
    %105 = vector.broadcast %cst_30 : f32 to vector<8x32xf32>
    %106 = arith.addf %105, %104 : vector<8x32xf32>
    %107 = arith.divf %105, %106 : vector<8x32xf32>
    %108 = vector.extract_strided_slice %101 {offsets = [0, 32], sizes = [8, 32], strides = [1, 1]} : vector<8x128xf32> to vector<8x32xf32>
    %109 = arith.negf %108 : vector<8x32xf32>
    %110 = math.exp %109 : vector<8x32xf32>
    %cst_31 = arith.constant 1.000000e+00 : f32
    %111 = vector.broadcast %cst_31 : f32 to vector<8x32xf32>
    %112 = arith.addf %111, %110 : vector<8x32xf32>
    %113 = arith.divf %111, %112 : vector<8x32xf32>
    %114 = vector.extract_strided_slice %101 {offsets = [0, 64], sizes = [8, 32], strides = [1, 1]} : vector<8x128xf32> to vector<8x32xf32>
    %115 = math.tanh %114 : vector<8x32xf32>
    %116 = vector.extract_strided_slice %101 {offsets = [0, 96], sizes = [8, 32], strides = [1, 1]} : vector<8x128xf32> to vector<8x32xf32>
    %117 = arith.negf %116 : vector<8x32xf32>
    %118 = math.exp %117 : vector<8x32xf32>
    %cst_32 = arith.constant 1.000000e+00 : f32
    %119 = vector.broadcast %cst_32 : f32 to vector<8x32xf32>
    %120 = arith.addf %119, %118 : vector<8x32xf32>
    %121 = arith.divf %119, %120 : vector<8x32xf32>
    %122 = arith.mulf %113, %95 : vector<8x32xf32>
    %123 = arith.mulf %107, %115 : vector<8x32xf32>
    %124 = arith.addf %122, %123 : vector<8x32xf32>
    %125 = math.tanh %124 : vector<8x32xf32>
    %126 = arith.mulf %121, %125 : vector<8x32xf32>
    %c32 = arith.constant 32 : index
    %c0_33 = arith.constant 0 : index
    %127 = vector.load %arg8[%c32, %c0_33] : memref<64x128xf32, #tpu.memory_space<vmem>>, vector<8x128xf32>
    %128 = arith.truncf %126 : vector<8x32xf32> to vector<8x32xbf16>
    %cst_34 = arith.constant dense<0.000000e+00> : vector<8x128xf32>
    %129 = tpu.matmul %128, %8, %cst_34 {dimension_numbers = #tpu.dot_dimension_numbers<[1], [0], [0], [1], [0, 0, 1, 1], [], []>} : vector<8x32xbf16>, vector<32x128xbf16>, vector<8x128xf32> -> vector<8x128xf32>
    %130 = arith.addf %127, %129 : vector<8x128xf32>
    %131 = vector.extract_strided_slice %130 {offsets = [0, 0], sizes = [8, 32], strides = [1, 1]} : vector<8x128xf32> to vector<8x32xf32>
    %132 = arith.negf %131 : vector<8x32xf32>
    %133 = math.exp %132 : vector<8x32xf32>
    %cst_35 = arith.constant 1.000000e+00 : f32
    %134 = vector.broadcast %cst_35 : f32 to vector<8x32xf32>
    %135 = arith.addf %134, %133 : vector<8x32xf32>
    %136 = arith.divf %134, %135 : vector<8x32xf32>
    %137 = vector.extract_strided_slice %130 {offsets = [0, 32], sizes = [8, 32], strides = [1, 1]} : vector<8x128xf32> to vector<8x32xf32>
    %138 = arith.negf %137 : vector<8x32xf32>
    %139 = math.exp %138 : vector<8x32xf32>
    %cst_36 = arith.constant 1.000000e+00 : f32
    %140 = vector.broadcast %cst_36 : f32 to vector<8x32xf32>
    %141 = arith.addf %140, %139 : vector<8x32xf32>
    %142 = arith.divf %140, %141 : vector<8x32xf32>
    %143 = vector.extract_strided_slice %130 {offsets = [0, 64], sizes = [8, 32], strides = [1, 1]} : vector<8x128xf32> to vector<8x32xf32>
    %144 = math.tanh %143 : vector<8x32xf32>
    %145 = vector.extract_strided_slice %130 {offsets = [0, 96], sizes = [8, 32], strides = [1, 1]} : vector<8x128xf32> to vector<8x32xf32>
    %146 = arith.negf %145 : vector<8x32xf32>
    %147 = math.exp %146 : vector<8x32xf32>
    %cst_37 = arith.constant 1.000000e+00 : f32
    %148 = vector.broadcast %cst_37 : f32 to vector<8x32xf32>
    %149 = arith.addf %148, %147 : vector<8x32xf32>
    %150 = arith.divf %148, %149 : vector<8x32xf32>
    %151 = arith.mulf %142, %124 : vector<8x32xf32>
    %152 = arith.mulf %136, %144 : vector<8x32xf32>
    %153 = arith.addf %151, %152 : vector<8x32xf32>
    %154 = math.tanh %153 : vector<8x32xf32>
    %155 = arith.mulf %150, %154 : vector<8x32xf32>
    %c40 = arith.constant 40 : index
    %c0_38 = arith.constant 0 : index
    %156 = vector.load %arg8[%c40, %c0_38] : memref<64x128xf32, #tpu.memory_space<vmem>>, vector<8x128xf32>
    %157 = arith.truncf %155 : vector<8x32xf32> to vector<8x32xbf16>
    %cst_39 = arith.constant dense<0.000000e+00> : vector<8x128xf32>
    %158 = tpu.matmul %157, %8, %cst_39 {dimension_numbers = #tpu.dot_dimension_numbers<[1], [0], [0], [1], [0, 0, 1, 1], [], []>} : vector<8x32xbf16>, vector<32x128xbf16>, vector<8x128xf32> -> vector<8x128xf32>
    %159 = arith.addf %156, %158 : vector<8x128xf32>
    %160 = vector.extract_strided_slice %159 {offsets = [0, 0], sizes = [8, 32], strides = [1, 1]} : vector<8x128xf32> to vector<8x32xf32>
    %161 = arith.negf %160 : vector<8x32xf32>
    %162 = math.exp %161 : vector<8x32xf32>
    %cst_40 = arith.constant 1.000000e+00 : f32
    %163 = vector.broadcast %cst_40 : f32 to vector<8x32xf32>
    %164 = arith.addf %163, %162 : vector<8x32xf32>
    %165 = arith.divf %163, %164 : vector<8x32xf32>
    %166 = vector.extract_strided_slice %159 {offsets = [0, 32], sizes = [8, 32], strides = [1, 1]} : vector<8x128xf32> to vector<8x32xf32>
    %167 = arith.negf %166 : vector<8x32xf32>
    %168 = math.exp %167 : vector<8x32xf32>
    %cst_41 = arith.constant 1.000000e+00 : f32
    %169 = vector.broadcast %cst_41 : f32 to vector<8x32xf32>
    %170 = arith.addf %169, %168 : vector<8x32xf32>
    %171 = arith.divf %169, %170 : vector<8x32xf32>
    %172 = vector.extract_strided_slice %159 {offsets = [0, 64], sizes = [8, 32], strides = [1, 1]} : vector<8x128xf32> to vector<8x32xf32>
    %173 = math.tanh %172 : vector<8x32xf32>
    %174 = vector.extract_strided_slice %159 {offsets = [0, 96], sizes = [8, 32], strides = [1, 1]} : vector<8x128xf32> to vector<8x32xf32>
    %175 = arith.negf %174 : vector<8x32xf32>
    %176 = math.exp %175 : vector<8x32xf32>
    %cst_42 = arith.constant 1.000000e+00 : f32
    %177 = vector.broadcast %cst_42 : f32 to vector<8x32xf32>
    %178 = arith.addf %177, %176 : vector<8x32xf32>
    %179 = arith.divf %177, %178 : vector<8x32xf32>
    %180 = arith.mulf %171, %153 : vector<8x32xf32>
    %181 = arith.mulf %165, %173 : vector<8x32xf32>
    %182 = arith.addf %180, %181 : vector<8x32xf32>
    %183 = math.tanh %182 : vector<8x32xf32>
    %184 = arith.mulf %179, %183 : vector<8x32xf32>
    %c48 = arith.constant 48 : index
    %c0_43 = arith.constant 0 : index
    %185 = vector.load %arg8[%c48, %c0_43] : memref<64x128xf32, #tpu.memory_space<vmem>>, vector<8x128xf32>
    %186 = arith.truncf %184 : vector<8x32xf32> to vector<8x32xbf16>
    %cst_44 = arith.constant dense<0.000000e+00> : vector<8x128xf32>
    %187 = tpu.matmul %186, %8, %cst_44 {dimension_numbers = #tpu.dot_dimension_numbers<[1], [0], [0], [1], [0, 0, 1, 1], [], []>} : vector<8x32xbf16>, vector<32x128xbf16>, vector<8x128xf32> -> vector<8x128xf32>
    %188 = arith.addf %185, %187 : vector<8x128xf32>
    %189 = vector.extract_strided_slice %188 {offsets = [0, 0], sizes = [8, 32], strides = [1, 1]} : vector<8x128xf32> to vector<8x32xf32>
    %190 = arith.negf %189 : vector<8x32xf32>
    %191 = math.exp %190 : vector<8x32xf32>
    %cst_45 = arith.constant 1.000000e+00 : f32
    %192 = vector.broadcast %cst_45 : f32 to vector<8x32xf32>
    %193 = arith.addf %192, %191 : vector<8x32xf32>
    %194 = arith.divf %192, %193 : vector<8x32xf32>
    %195 = vector.extract_strided_slice %188 {offsets = [0, 32], sizes = [8, 32], strides = [1, 1]} : vector<8x128xf32> to vector<8x32xf32>
    %196 = arith.negf %195 : vector<8x32xf32>
    %197 = math.exp %196 : vector<8x32xf32>
    %cst_46 = arith.constant 1.000000e+00 : f32
    %198 = vector.broadcast %cst_46 : f32 to vector<8x32xf32>
    %199 = arith.addf %198, %197 : vector<8x32xf32>
    %200 = arith.divf %198, %199 : vector<8x32xf32>
    %201 = vector.extract_strided_slice %188 {offsets = [0, 64], sizes = [8, 32], strides = [1, 1]} : vector<8x128xf32> to vector<8x32xf32>
    %202 = math.tanh %201 : vector<8x32xf32>
    %203 = vector.extract_strided_slice %188 {offsets = [0, 96], sizes = [8, 32], strides = [1, 1]} : vector<8x128xf32> to vector<8x32xf32>
    %204 = arith.negf %203 : vector<8x32xf32>
    %205 = math.exp %204 : vector<8x32xf32>
    %cst_47 = arith.constant 1.000000e+00 : f32
    %206 = vector.broadcast %cst_47 : f32 to vector<8x32xf32>
    %207 = arith.addf %206, %205 : vector<8x32xf32>
    %208 = arith.divf %206, %207 : vector<8x32xf32>
    %209 = arith.mulf %200, %182 : vector<8x32xf32>
    %210 = arith.mulf %194, %202 : vector<8x32xf32>
    %211 = arith.addf %209, %210 : vector<8x32xf32>
    %212 = math.tanh %211 : vector<8x32xf32>
    %213 = arith.mulf %208, %212 : vector<8x32xf32>
    %c56 = arith.constant 56 : index
    %c0_48 = arith.constant 0 : index
    %214 = vector.load %arg8[%c56, %c0_48] : memref<64x128xf32, #tpu.memory_space<vmem>>, vector<8x128xf32>
    %215 = arith.truncf %213 : vector<8x32xf32> to vector<8x32xbf16>
    %cst_49 = arith.constant dense<0.000000e+00> : vector<8x128xf32>
    %216 = tpu.matmul %215, %8, %cst_49 {dimension_numbers = #tpu.dot_dimension_numbers<[1], [0], [0], [1], [0, 0, 1, 1], [], []>} : vector<8x32xbf16>, vector<32x128xbf16>, vector<8x128xf32> -> vector<8x128xf32>
    %217 = arith.addf %214, %216 : vector<8x128xf32>
    %218 = vector.extract_strided_slice %217 {offsets = [0, 0], sizes = [8, 32], strides = [1, 1]} : vector<8x128xf32> to vector<8x32xf32>
    %219 = arith.negf %218 : vector<8x32xf32>
    %220 = math.exp %219 : vector<8x32xf32>
    %cst_50 = arith.constant 1.000000e+00 : f32
    %221 = vector.broadcast %cst_50 : f32 to vector<8x32xf32>
    %222 = arith.addf %221, %220 : vector<8x32xf32>
    %223 = arith.divf %221, %222 : vector<8x32xf32>
    %224 = vector.extract_strided_slice %217 {offsets = [0, 32], sizes = [8, 32], strides = [1, 1]} : vector<8x128xf32> to vector<8x32xf32>
    %225 = arith.negf %224 : vector<8x32xf32>
    %226 = math.exp %225 : vector<8x32xf32>
    %cst_51 = arith.constant 1.000000e+00 : f32
    %227 = vector.broadcast %cst_51 : f32 to vector<8x32xf32>
    %228 = arith.addf %227, %226 : vector<8x32xf32>
    %229 = arith.divf %227, %228 : vector<8x32xf32>
    %230 = vector.extract_strided_slice %217 {offsets = [0, 64], sizes = [8, 32], strides = [1, 1]} : vector<8x128xf32> to vector<8x32xf32>
    %231 = math.tanh %230 : vector<8x32xf32>
    %232 = vector.extract_strided_slice %217 {offsets = [0, 96], sizes = [8, 32], strides = [1, 1]} : vector<8x128xf32> to vector<8x32xf32>
    %233 = arith.negf %232 : vector<8x32xf32>
    %234 = math.exp %233 : vector<8x32xf32>
    %cst_52 = arith.constant 1.000000e+00 : f32
    %235 = vector.broadcast %cst_52 : f32 to vector<8x32xf32>
    %236 = arith.addf %235, %234 : vector<8x32xf32>
    %237 = arith.divf %235, %236 : vector<8x32xf32>
    %238 = arith.mulf %229, %211 : vector<8x32xf32>
    %239 = arith.mulf %223, %231 : vector<8x32xf32>
    %240 = arith.addf %238, %239 : vector<8x32xf32>
    %241 = math.tanh %240 : vector<8x32xf32>
    %242 = arith.mulf %237, %241 : vector<8x32xf32>
    %243 = arith.truncf %242 : vector<8x32xf32> to vector<8x32xbf16>
    %c0_53 = arith.constant 0 : index
    %c0_54 = arith.constant 0 : index
    %244 = vector.load %arg5[%c0_53, %c0_54] : memref<32x128xbf16, #tpu.memory_space<vmem>>, vector<32x128xbf16>
    %cst_55 = arith.constant dense<0.000000e+00> : vector<8x128xf32>
    %245 = tpu.matmul %243, %244, %cst_55 {dimension_numbers = #tpu.dot_dimension_numbers<[1], [0], [0], [1], [0, 0, 1, 1], [], []>} : vector<8x32xbf16>, vector<32x128xbf16>, vector<8x128xf32> -> vector<8x128xf32>
    %c0_56 = arith.constant 0 : index
    %c0_57 = arith.constant 0 : index
    %246 = vector.load %arg6[%c0_56, %c0_57] : memref<1x128xf32, #tpu.memory_space<vmem>>, vector<1x128xf32>
    %247 = vector.broadcast %246 : vector<1x128xf32> to vector<8x128xf32>
    %248 = arith.addf %245, %247 : vector<8x128xf32>
    %c0_58 = arith.constant 0 : index
    %c0_59 = arith.constant 0 : index
    %249 = vector.load %arg7[%c0_58, %c0_59] : memref<8x128xf32, #tpu.memory_space<vmem>>, vector<8x128xf32>
    tpu.vector_store %arg7[%c0_58, %c0_59], %248 {strides = array<i32>} : memref<8x128xf32, #tpu.memory_space<vmem>>, vector<8x128xf32>,
    return
  }
  func.func @transform_0(%arg0: i32) -> (i32, i32, i32) {
    %c0_i32 = arith.constant 0 : i32
    %c0_i32_0 = arith.constant 0 : i32
    %c0_i32_1 = arith.constant 0 : i32
    %c0_i32_2 = arith.constant 0 : i32
    return %c0_i32, %c0_i32_0, %c0_i32_1 : i32, i32, i32
  }
  func.func @transform_1(%arg0: i32) -> (i32, i32) {
    %c0_i32 = arith.constant 0 : i32
    %c0_i32_0 = arith.constant 0 : i32
    %c0_i32_1 = arith.constant 0 : i32
    return %c0_i32, %c0_i32_0 : i32, i32
  }
  func.func @transform_2(%arg0: i32) -> (i32, i32) {
    %c0_i32 = arith.constant 0 : i32
    %c0_i32_0 = arith.constant 0 : i32
    %c0_i32_1 = arith.constant 0 : i32
    return %c0_i32, %c0_i32_0 : i32, i32
  }
  func.func @transform_3(%arg0: i32) -> (i32, i32) {
    %c0_i32 = arith.constant 0 : i32
    %c0_i32_0 = arith.constant 0 : i32
    %c0_i32_1 = arith.constant 0 : i32
    return %c0_i32, %c0_i32_0 : i32, i32
  }
  func.func @transform_4(%arg0: i32) -> (i32, i32) {
    %c0_i32 = arith.constant 0 : i32
    %c0_i32_0 = arith.constant 0 : i32
    %c0_i32_1 = arith.constant 0 : i32
    return %c0_i32, %c0_i32_0 : i32, i32
  }
  func.func @transform_5(%arg0: i32) -> (i32, i32) {
    %c0_i32 = arith.constant 0 : i32
    %c0_i32_0 = arith.constant 0 : i32
    %c0_i32_1 = arith.constant 0 : i32
    return %c0_i32, %c0_i32_0 : i32, i32
  }
  func.func @transform_6(%arg0: i32) -> (i32, i32) {
    %c0_i32 = arith.constant 0 : i32
    %c0_i32_0 = arith.constant 0 : i32
    %c0_i32_1 = arith.constant 0 : i32
    return %c0_i32, %c0_i32_0 : i32, i32
  }
}

</mosaic_0001>

<bundles_post_ra>
// kernel: classification_lstm_forward.1
= control target key start
LH: loop header
LB: loop body
LE: loop exit
PB: predicated region body
PF: predicated region fallthrough
CT: control target
= control target key end

     0   :  { %v1048_v0 = vmov 0.0   ;;  %vm1049_vm0 = vmmov 0   ;;  %vm67_vm1 = vcmask 130048   ;;  %v1050_v6 = vmov 0   ;;  %s1051_s7 = smov 64   ;;  %s1252_s1 = inlined_call_operand.vmem [shape: bf16[16,128], index: 1, kind: input, shape index: {}]   ;;  %s1253_s2 = inlined_call_operand.vmem [shape: bf16[32,128], index: 2, kind: input, shape index: {}]   ;;  %s1254_s0 = inlined_call_operand.vmem [shape: bf16[8,8,16], index: 0, kind: input, shape index: {}]   ;;  %s1255_s3 = inlined_call_operand.vmem [shape: f32[1,128], index: 3, kind: input, shape index: {}]   ;;  %s1256_s4 = inlined_call_operand.vmem [shape: bf16[32,128], index: 4, kind: input, shape index: {}]   ;;  %s1257_s5 = inlined_call_operand.vmem [shape: f32[1,128], index: 5, kind: input, shape index: {}]   ;;  %s1258_s6 = inlined_call_operand.vmem [shape: f32[8,128], index: 6, kind: output, shape index: {}]  }
   0x1   :  { %898 = vmatprep.subr.bf16.mxu1 %v1048_v0  ;;  %v975_v1 = vld [vmem:[%s1252_s1] sm:$0xff]   ;;  %902 = vmatprep.mubr.msk.bf16.mxu1 %vm1049_vm0, %v1048_v0  ;;  %v978_v4 = vld [vmem:[%s1254_s0 + $0x8] sm:$0xff]   ;;  %vm170_vm2 = vcmask 261120   ;;  %v980_v49 = vld [vmem:[%s1254_s0 + $0x10] sm:$0xff]  }
   0x2   :  { %v1097_v2 = vld [vmem:[%s1253_s2] sm:$0xff]   ;;  %888 = vmatprep.subr.bf16.mxu0 %v975_v1  ;;  %v1111_v5 = vld [vmem:[%s1253_s2 + $0x8] sm:$0xff]   ;;  %v981_v50 = vld [vmem:[%s1254_s0 + $0x18] sm:$0xff]  }
   0x3   :  { %v977_v3 = vld [vmem:[%s1254_s0] sm:$0xff]   ;;  %899 = vmatpush3.bf16.msra.mxu1 %v1097_v2  ;;  %889 = vmatpush3.bf16.msra.mxu0 %v975_v1 }
   0x4   :  { %890 = vmatprep.mubr.msk.bf16.mxu0 %vm67_vm1, %v977_v3  ;;  %900 = vmatprep.subr.bf16.mxu1 %v1048_v0  ;;  %v1130_v7 = vld [vmem:[%s1255_s3] ss:$0 sm:$0xff]  ;;  %s1052_s3 = smov 32  }
   0x5   :  { %914 = vmatprep.subr.bf16.mxu0 %v1048_v0 }
   0x6   :  { %891 = vmatmul.mubr.msk.bf16.vlgmr.msra.gmra.mrb[0].mxu0 %vm67_vm1, %v978_v4 }
   0x7   :  { %901 = vmatpush3.bf16.msra.mxu1 %v1111_v5  ;;  %915 = vmatpush3.bf16.msra.mxu0 %v1097_v2 }
   0x8   :  { %906 = vmatprep.subr.bf16.mxu1 %v1048_v0  ;;  %916 = vmatprep.subr.bf16.mxu0 %v1048_v0 }
   0x9   :  { %894 = vmatprep.mubr.msk.bf16.mxu0 %vm67_vm1, %v980_v49 }
   0xa   :  { %903 = vmatmul.mubr.bf16.vlgmr.msra.gmra.mrb[0].mxu1 %v1050_v6 }
   0xb   :  { %907 = vmatpush3.bf16.msra.mxu1 %v1097_v2  ;;  %910 = vmatprep.mubr.msk.bf16.mxu1 %vm1049_vm0, %v1048_v0 }
   0xc   :  { %908 = vmatprep.subr.bf16.mxu1 %v1048_v0  ;;  %917 = vmatpush3.bf16.msra.mxu0 %v1111_v5 }
   0xd   :  { %930 = vmatprep.subr.bf16.mxu0 %v1048_v0 }
   0xe   :  { %895 = vmatmul.mubr.msk.bf16.gmra.mrb[4].mxu0 %vm67_vm1, %v981_v50 }
   0xf   :  { %909 = vmatpush3.bf16.msra.mxu1 %v1111_v5  ;;  %918 = vmatprep.mubr.msk.bf16.mxu0 %vm1049_vm0, %v1048_v0 }
  0x10   :  { %922 = vmatprep.subr.bf16.mxu1 %v1048_v0 }
  0xd9   :  { %v1132_v8 = vpop.f32.mrb[0].mxu0 }
  0xda   :  { %v114_v9 = vpop.f32.mrb[1].mxu0  ;;  %v123_v60 = vadd.f32 %v1132_v8, %v1130_v7 }
  0xdb   :  { %v115_v10 = vadd.f32 %v1130_v7, %v114_v9  ;;  %v1135_v11 = vpop.f32.mrb[2].mxu0 }
  0xdc   :  { %v117_v12 = vpop.f32.mrb[3].mxu0 }
  0xdd   :  { %v208_v13 = vpop.f32.mrb[0].mxu1  ;;  %v118_v33 = vadd.f32 %v1130_v7, %v117_v12 }
  0xde   :  { %v214_v14 = vadd.f32 %v208_v13, %v115_v10  ;;  %v904_v15 = vpop.f32.mrb[1].mxu1 }
  0xdf   :  { %v211_v16 = vpop.f32.mrb[2].mxu1 }
  0xe0   :  { %984 = vtanh.f32 %v214_v14  ;;  %v905_v17 = vpop.f32.mrb[3].mxu1  ;;  %v837_v19 = vmul.f32 -1.442695, %v214_v14 }
  0xe1   :  { %v1163_v55 = vpop.f32.mrb[4].mxu0 }
  0xe2   :  { %986 = vpow2.f32 %v837_v19  ;;  %v1165_v56 = vpop.f32.mrb[5].mxu0 }
  0xe3   :  { %v1167_v57 = vpop.f32.mrb[6].mxu0 }
  0xe4   :  { %v1169_v58 = vpop.f32.mrb[7].mxu0 }
  0xea   :  { %v985_v18 = vpop.eup %984 }
  0xeb   :  { %224 = vrot.lane.b32.xlu0 %v985_v18, %s1051_s7 }
  0xec   :  { %v987_v20 = vpop.eup %986 }
  0xed   :  { %v218_v21 = vadd.f32 1.0, %v987_v20 }
  0xef   :  { %988 = vrcp.f32 %v218_v21 }
  0xf9   :  { %v989_v22 = vpop.eup %988 }
  0xfa   :  { %v222_v25 = vmul.f32 0.0, %v989_v22 }
 0x15d   :  { %v225_v23 = vpop.permute.xlu0 %224 }
 0x15e   :  { %v227_v24 = vmul.f32 %v989_v22, %v225_v23 }
 0x160   :  { %229 = vrot.lane.b32.xlu0 %v227_v24, %s1052_s3 }
 0x1d2   :  { %v230_v26 = vpop.permute.xlu0 %229 }
 0x1d3   :  { %v232_v27 = vadd.f32 %v230_v26, %v222_v25 }
 0x1d5   :  { %990 = vtanh.f32 %v232_v27 }
 0x1df   :  { %v991_v28 = vpop.eup %990 }
 0x1e0   :  { %235 = vrot.lane.b32.xlu1 %v991_v28, %s1051_s7 }
 0x252   :  { %v236_v29 = vpop.permute.xlu1 %235 }
 0x253   :  { %v238_v30 = vmul.f32 %v989_v22, %v236_v29  ;;  %v126_v22 = vadd.f32 %v1135_v11, %v1130_v7 }
 0x255   :  { %v240_v31 = vpack.c.bf16 %v238_v30, %v238_v30 }
 0x257   :  { %242 = vrot.lane.b32.xlu1 %v240_v31, %s1052_s3 }
 0x2c9   :  { %v243_v32 = vpop.permute.xlu1 %242 }
 0x2ca   :  { %911 = vmatmul.mubr.msk.bf16.vlgmr.msra.gmra.mrb[4].mxu1 %vm170_vm2, %v243_v32 }
 0x2cb   :  { %923 = vmatpush3.bf16.msra.mxu1 %v1097_v2  ;;  %926 = vmatprep.mubr.msk.bf16.mxu1 %vm1049_vm0, %v1048_v0 }
 0x2cc   :  { %924 = vmatprep.subr.bf16.mxu1 %v1048_v0 }
 0x2cf   :  { %925 = vmatpush3.bf16.msra.mxu1 %v1111_v5 }
 0x2d0   :  { %938 = vmatprep.subr.bf16.mxu1 %v1048_v0 }
 0x39d   :  { %v281_v34 = vpop.f32.mrb[4].mxu1 }
 0x39e   :  { %v287_v35 = vadd.f32 %v281_v34, %v118_v33  ;;  %v912_v36 = vpop.f32.mrb[5].mxu1 }
 0x39f   :  { %v284_v37 = vpop.f32.mrb[6].mxu1 }
 0x3a0   :  { %992 = vtanh.f32 %v287_v35  ;;  %v913_v38 = vpop.f32.mrb[7].mxu1  ;;  %v839_v40 = vmul.f32 -1.442695, %v287_v35 }
 0x3a2   :  { %994 = vpow2.f32 %v839_v40 }
 0x3aa   :  { %v993_v39 = vpop.eup %992 }
 0x3ab   :  { %297 = vrot.lane.b32.xlu0 %v993_v39, %s1051_s7 }
 0x3ac   :  { %v995_v41 = vpop.eup %994 }
 0x3ad   :  { %v291_v42 = vadd.f32 1.0, %v995_v41 }
 0x3af   :  { %996 = vrcp.f32 %v291_v42  ;;  %v131_v42 = vadd.f32 %v1130_v7, %v1165_v56 }
 0x3b9   :  { %v997_v43 = vpop.eup %996 }
 0x3ba   :  { %v295_v46 = vmul.f32 %v997_v43, %v232_v27 }
 0x41d   :  { %v298_v44 = vpop.permute.xlu0 %297 }
 0x41e   :  { %v300_v45 = vmul.f32 %v997_v43, %v298_v44 }
 0x420   :  { %302 = vrot.lane.b32.xlu1 %v300_v45, %s1052_s3 }
 0x492   :  { %v303_v47 = vpop.permute.xlu1 %302 }
 0x493   :  { %v305_v48 = vadd.f32 %v303_v47, %v295_v46 }
 0x495   :  { %998 = vtanh.f32 %v305_v48 }
 0x49f   :  { %v999_v51 = vpop.eup %998 }
 0x4a0   :  { %308 = vrot.lane.b32.xlu0 %v999_v51, %s1051_s7 }
 0x512   :  { %v309_v52 = vpop.permute.xlu0 %308 }
 0x513   :  { %v311_v53 = vmul.f32 %v997_v43, %v309_v52 }
 0x515   :  { %v313_v54 = vpack.c.bf16 %v311_v53, %v311_v53 }
 0x517   :  { %315 = vrot.lane.b32.xlu1 %v313_v54, %s1052_s3 }
 0x589   :  { %v316_v59 = vpop.permute.xlu1 %315 }
 0x58a   :  { %919 = vmatmul.mubr.msk.bf16.vlgmr.msra.gmra.mrb[8].mxu0 %vm170_vm2, %v316_v59 }
 0x58b   :  { %931 = vmatpush3.bf16.msra.mxu0 %v1097_v2  ;;  %934 = vmatprep.mubr.msk.bf16.mxu0 %vm1049_vm0, %v1048_v0 }
 0x58c   :  { %932 = vmatprep.subr.bf16.mxu0 %v1048_v0 }
 0x58f   :  { %933 = vmatpush3.bf16.msra.mxu0 %v1111_v5 }
 0x590   :  { %946 = vmatprep.subr.bf16.mxu0 %v1048_v0 }
 0x65d   :  { %v354_v61 = vpop.f32.mrb[8].mxu0 }
 0x65e   :  { %v360_v62 = vadd.f32 %v354_v61, %v123_v60  ;;  %v920_v63 = vpop.f32.mrb[9].mxu0 }
 0x65f   :  { %v357_v1 = vpop.f32.mrb[10].mxu0 }
 0x660   :  { %1000 = vtanh.f32 %v360_v62  ;;  %v921_v3 = vpop.f32.mrb[11].mxu0  ;;  %v841_v6 = vmul.f32 -1.442695, %v360_v62 }
 0x662   :  { %1002 = vpow2.f32 %v841_v6 }
 0x66a   :  { %v1001_v4 = vpop.eup %1000 }
 0x66b   :  { %370 = vrot.lane.b32.xlu0 %v1001_v4, %s1051_s7  ;;  %v134_v4 = vadd.f32 %v1130_v7, %v1169_v58 }
 0x66c   :  { %v1003_v9 = vpop.eup %1002 }
 0x66d   :  { %v364_v10 = vadd.f32 1.0, %v1003_v9 }
 0x66f   :  { %1004 = vrcp.f32 %v364_v10 }
 0x679   :  { %v1005_v12 = vpop.eup %1004 }
 0x67a   :  { %v368_v8 = vmul.f32 %v1005_v12, %v305_v48 }
 0x6dd   :  { %v371_v13 = vpop.permute.xlu0 %370 }
 0x6de   :  { %v373_v14 = vmul.f32 %v1005_v12, %v371_v13 }
 0x6e0   :  { %375 = vrot.lane.b32.xlu1 %v373_v14, %s1052_s3 }
 0x752   :  { %v376_v15 = vpop.permute.xlu1 %375 }
 0x753   :  { %v378_v16 = vadd.f32 %v376_v15, %v368_v8 }
 0x755   :  { %1006 = vtanh.f32 %v378_v16 }
 0x75f   :  { %v1007_v17 = vpop.eup %1006 }
 0x760   :  { %381 = vrot.lane.b32.xlu0 %v1007_v17, %s1051_s7 }
 0x7d2   :  { %v382_v18 = vpop.permute.xlu0 %381 }
 0x7d3   :  { %v384_v19 = vmul.f32 %v1005_v12, %v382_v18 }
 0x7d5   :  { %v386_v20 = vpack.c.bf16 %v384_v19, %v384_v19 }
 0x7d7   :  { %388 = vrot.lane.b32.xlu1 %v386_v20, %s1052_s3 }
 0x849   :  { %v389_v21 = vpop.permute.xlu1 %388 }
 0x84a   :  { %927 = vmatmul.mubr.msk.bf16.vlgmr.msra.gmra.mrb[8].mxu1 %vm170_vm2, %v389_v21 }
 0x84b   :  { %939 = vmatpush3.bf16.msra.mxu1 %v1097_v2  ;;  %942 = vmatprep.mubr.msk.bf16.mxu1 %vm1049_vm0, %v1048_v0 }
 0x84c   :  { %940 = vmatprep.subr.bf16.mxu1 %v1048_v0 }
 0x84f   :  { %941 = vmatpush3.bf16.msra.mxu1 %v1111_v5 }
 0x850   :  { %954 = vmatprep.subr.bf16.mxu1 %v1048_v0 }
 0x91d   :  { %v427_v23 = vpop.f32.mrb[8].mxu1 }
 0x91e   :  { %v433_v24 = vadd.f32 %v427_v23, %v126_v22  ;;  %v928_v25 = vpop.f32.mrb[9].mxu1 }
 0x91f   :  { %v430_v26 = vpop.f32.mrb[10].mxu1  ;;  %v139_v25 = vadd.f32 %v1163_v55, %v1130_v7 }
 0x920   :  { %1008 = vtanh.f32 %v433_v24  ;;  %v929_v27 = vpop.f32.mrb[11].mxu1  ;;  %v843_v29 = vmul.f32 -1.442695, %v433_v24 }
 0x922   :  { %1010 = vpow2.f32 %v843_v29 }
 0x92a   :  { %v1009_v28 = vpop.eup %1008 }
 0x92b   :  { %443 = vrot.lane.b32.xlu0 %v1009_v28, %s1051_s7 }
 0x92c   :  { %v1011_v30 = vpop.eup %1010 }
 0x92d   :  { %v437_v31 = vadd.f32 1.0, %v1011_v30 }
 0x92f   :  { %1012 = vrcp.f32 %v437_v31 }
 0x939   :  { %v1013_v32 = vpop.eup %1012 }
 0x93a   :  { %v441_v11 = vmul.f32 %v1013_v32, %v378_v16 }
 0x99d   :  { %v444_v33 = vpop.permute.xlu0 %443 }
 0x99e   :  { %v446_v34 = vmul.f32 %v1013_v32, %v444_v33 }
 0x9a0   :  { %448 = vrot.lane.b32.xlu1 %v446_v34, %s1052_s3 }
 0xa12   :  { %v449_v35 = vpop.permute.xlu1 %448 }
 0xa13   :  { %v451_v36 = vadd.f32 %v449_v35, %v441_v11 }
 0xa15   :  { %1014 = vtanh.f32 %v451_v36 }
 0xa1f   :  { %v1015_v37 = vpop.eup %1014 }
 0xa20   :  { %454 = vrot.lane.b32.xlu0 %v1015_v37, %s1051_s7 }
 0xa92   :  { %v455_v38 = vpop.permute.xlu0 %454 }
 0xa93   :  { %v457_v39 = vmul.f32 %v1013_v32, %v455_v38 }
 0xa95   :  { %v459_v40 = vpack.c.bf16 %v457_v39, %v457_v39 }
 0xa97   :  { %461 = vrot.lane.b32.xlu1 %v459_v40, %s1052_s3 }
 0xb09   :  { %v462_v41 = vpop.permute.xlu1 %461 }
 0xb0a   :  { %935 = vmatmul.mubr.msk.bf16.vlgmr.msra.gmra.mrb[12].mxu0 %vm170_vm2, %v462_v41 }
 0xb0b   :  { %947 = vmatpush3.bf16.msra.mxu0 %v1097_v2  ;;  %950 = vmatprep.mubr.msk.bf16.mxu0 %vm1049_vm0, %v1048_v0 }
 0xb0c   :  { %948 = vmatprep.subr.bf16.mxu0 %v1048_v0 }
 0xb0f   :  { %949 = vmatpush3.bf16.msra.mxu0 %v1111_v5 }
 0xb10   :  { %962 = vmatprep.subr.bf16.mxu0 %v1048_v0 }
 0xbdd   :  { %v500_v43 = vpop.f32.mrb[12].mxu0 }
 0xbde   :  { %v506_v44 = vadd.f32 %v500_v43, %v131_v42  ;;  %v936_v45 = vpop.f32.mrb[13].mxu0 }
 0xbdf   :  { %v503_v46 = vpop.f32.mrb[14].mxu0 }
 0xbe0   :  { %1016 = vtanh.f32 %v506_v44  ;;  %v937_v47 = vpop.f32.mrb[15].mxu0  ;;  %v845_v49 = vmul.f32 -1.442695, %v506_v44  ;;  %v142_v44 = vadd.f32 %v1167_v57, %v1130_v7 }
 0xbe2   :  { %1018 = vpow2.f32 %v845_v49 }
 0xbea   :  { %v1017_v48 = vpop.eup %1016 }
 0xbeb   :  { %516 = vrot.lane.b32.xlu0 %v1017_v48, %s1051_s7 }
 0xbec   :  { %v1019_v50 = vpop.eup %1018 }
 0xbed   :  { %v510_v51 = vadd.f32 1.0, %v1019_v50 }
 0xbef   :  { %1020 = vrcp.f32 %v510_v51 }
 0xbf9   :  { %v1021_v52 = vpop.eup %1020 }
 0xbfa   :  { %v514_v56 = vmul.f32 %v1021_v52, %v451_v36 }
 0xc5d   :  { %v517_v53 = vpop.permute.xlu0 %516 }
 0xc5e   :  { %v519_v54 = vmul.f32 %v1021_v52, %v517_v53 }
 0xc60   :  { %521 = vrot.lane.b32.xlu1 %v519_v54, %s1052_s3 }
 0xcd2   :  { %v522_v59 = vpop.permute.xlu1 %521 }
 0xcd3   :  { %v524_v60 = vadd.f32 %v522_v59, %v514_v56 }
 0xcd5   :  { %1022 = vtanh.f32 %v524_v60 }
 0xcdf   :  { %v1023_v61 = vpop.eup %1022 }
 0xce0   :  { %527 = vrot.lane.b32.xlu0 %v1023_v61, %s1051_s7  ;;  %v982_v61 = vld [vmem:[%s1256_s4] sm:$0xff]  }
 0xd52   :  { %v528_v62 = vpop.permute.xlu0 %527 }
 0xd53   :  { %v530_v63 = vmul.f32 %v1021_v52, %v528_v62  ;;  %v983_v62 = vld [vmem:[%s1256_s4 + $0x8] sm:$0xff]  }
 0xd55   :  { %v532_v1 = vpack.c.bf16 %v530_v63, %v530_v63 }
 0xd57   :  { %534 = vrot.lane.b32.xlu1 %v532_v1, %s1052_s3 }
 0xdc9   :  { %v535_v3 = vpop.permute.xlu1 %534 }
 0xdca   :  { %943 = vmatmul.mubr.msk.bf16.vlgmr.msra.gmra.mrb[12].mxu1 %vm170_vm2, %v535_v3 }
 0xdcb   :  { %955 = vmatpush3.bf16.msra.mxu1 %v1097_v2  ;;  %958 = vmatprep.mubr.msk.bf16.mxu1 %vm1049_vm0, %v1048_v0 }
 0xdcc   :  { %956 = vmatprep.subr.bf16.mxu1 %v1048_v0 }
 0xdcf   :  { %957 = vmatpush3.bf16.msra.mxu1 %v1111_v5 }
 0xe9d   :  { %v573_v6 = vpop.f32.mrb[12].mxu1 }
 0xe9e   :  { %v579_v9 = vadd.f32 %v573_v6, %v134_v4  ;;  %v944_v10 = vpop.f32.mrb[13].mxu1 }
 0xe9f   :  { %v576_v12 = vpop.f32.mrb[14].mxu1 }
 0xea0   :  { %1024 = vtanh.f32 %v579_v9  ;;  %v945_v13 = vpop.f32.mrb[15].mxu1  ;;  %v847_v2 = vmul.f32 -1.442695, %v579_v9  ;;  %v852_v9 = vld [vmem:[%s1257_s5] ss:$0 sm:$0xff] }
 0xea2   :  { %1026 = vpow2.f32 %v847_v2 }
 0xeaa   :  { %v1025_v14 = vpop.eup %1024 }
 0xeab   :  { %589 = vrot.lane.b32.xlu0 %v1025_v14, %s1051_s7 }
 0xeac   :  { %v1027_v8 = vpop.eup %1026 }
 0xead   :  { %v583_v15 = vadd.f32 1.0, %v1027_v8 }
 0xeaf   :  { %1028 = vrcp.f32 %v583_v15 }
 0xeb9   :  { %v1029_v16 = vpop.eup %1028 }
 0xeba   :  { %v587_v58 = vmul.f32 %v1029_v16, %v524_v60 }
 0xf1d   :  { %v590_v17 = vpop.permute.xlu0 %589 }
 0xf1e   :  { %v592_v5 = vmul.f32 %v1029_v16, %v590_v17 }
 0xf20   :  { %594 = vrot.lane.b32.xlu1 %v592_v5, %s1052_s3 }
 0xf92   :  { %v595_v18 = vpop.permute.xlu1 %594 }
 0xf93   :  { %v597_v19 = vadd.f32 %v595_v18, %v587_v58 }
 0xf95   :  { %1030 = vtanh.f32 %v597_v19 }
 0xf9f   :  { %v1031_v20 = vpop.eup %1030 }
 0xfa0   :  { %600 = vrot.lane.b32.xlu0 %v1031_v20, %s1051_s7 }
0x1012   :  { %v601_v21 = vpop.permute.xlu0 %600 }
0x1013   :  { %v603_v22 = vmul.f32 %v1029_v16, %v601_v21 }
0x1015   :  { %v605_v23 = vpack.c.bf16 %v603_v22, %v603_v22 }
0x1017   :  { %607 = vrot.lane.b32.xlu1 %v605_v23, %s1052_s3 }
0x1089   :  { %v608_v24 = vpop.permute.xlu1 %607 }
0x108a   :  { %951 = vmatmul.mubr.msk.bf16.vlgmr.msra.gmra.mrb[16].mxu0 %vm170_vm2, %v608_v24 }
0x108b   :  { %966 = vmatprep.mubr.msk.bf16.mxu0 %vm1049_vm0, %v1048_v0  ;;  %963 = vmatpush3.bf16.msra.mxu0 %v982_v61 }
0x108c   :  { %964 = vmatprep.subr.bf16.mxu0 %v1048_v0 }
0x108f   :  { %965 = vmatpush3.bf16.msra.mxu0 %v983_v62 }
0x115d   :  { %v646_v26 = vpop.f32.mrb[16].mxu0 }
0x115e   :  { %v652_v27 = vadd.f32 %v646_v26, %v139_v25  ;;  %v952_v28 = vpop.f32.mrb[17].mxu0 }
0x115f   :  { %v649_v29 = vpop.f32.mrb[18].mxu0 }
0x1160   :  { %1032 = vtanh.f32 %v652_v27  ;;  %v953_v30 = vpop.f32.mrb[19].mxu0  ;;  %v849_v32 = vmul.f32 -1.442695, %v652_v27 }
0x1162   :  { %1034 = vpow2.f32 %v849_v32 }
0x116a   :  { %v1033_v31 = vpop.eup %1032 }
0x116b   :  { %662 = vrot.lane.b32.xlu0 %v1033_v31, %s1051_s7 }
0x116c   :  { %v1035_v33 = vpop.eup %1034 }
0x116d   :  { %v656_v34 = vadd.f32 1.0, %v1035_v33 }
0x116f   :  { %1036 = vrcp.f32 %v656_v34 }
0x1179   :  { %v1037_v11 = vpop.eup %1036 }
0x117a   :  { %v660_v55 = vmul.f32 %v1037_v11, %v597_v19 }
0x11dd   :  { %v663_v35 = vpop.permute.xlu0 %662 }
0x11de   :  { %v665_v36 = vmul.f32 %v1037_v11, %v663_v35 }
0x11e0   :  { %667 = vrot.lane.b32.xlu1 %v665_v36, %s1052_s3 }
0x1252   :  { %v668_v37 = vpop.permute.xlu1 %667 }
0x1253   :  { %v670_v38 = vadd.f32 %v668_v37, %v660_v55 }
0x1255   :  { %1038 = vtanh.f32 %v670_v38 }
0x125f   :  { %v1039_v39 = vpop.eup %1038 }
0x1260   :  { %673 = vrot.lane.b32.xlu0 %v1039_v39, %s1051_s7 }
0x12d2   :  { %v674_v40 = vpop.permute.xlu0 %673 }
0x12d3   :  { %v676_v41 = vmul.f32 %v1037_v11, %v674_v40 }
0x12d5   :  { %v678_v42 = vpack.c.bf16 %v676_v41, %v676_v41 }
0x12d7   :  { %680 = vrot.lane.b32.xlu1 %v678_v42, %s1052_s3 }
0x1349   :  { %v681_v43 = vpop.permute.xlu1 %680 }
0x134a   :  { %959 = vmatmul.mubr.msk.bf16.vlgmr.msra.gmra.mrb[16].mxu1 %vm170_vm2, %v681_v43 }
0x141d   :  { %v719_v45 = vpop.f32.mrb[16].mxu1 }
0x141e   :  { %v725_v46 = vadd.f32 %v719_v45, %v142_v44  ;;  %v960_v47 = vpop.f32.mrb[17].mxu1 }
0x141f   :  { %v722_v48 = vpop.f32.mrb[18].mxu1 }
0x1420   :  { %1040 = vtanh.f32 %v725_v46  ;;  %v961_v49 = vpop.f32.mrb[19].mxu1  ;;  %v851_v51 = vmul.f32 -1.442695, %v725_v46 }
0x1422   :  { %1042 = vpow2.f32 %v851_v51 }
0x142a   :  { %v1041_v50 = vpop.eup %1040 }
0x142b   :  { %735 = vrot.lane.b32.xlu0 %v1041_v50, %s1051_s7 }
0x142c   :  { %v1043_v52 = vpop.eup %1042 }
0x142d   :  { %v729_v53 = vadd.f32 1.0, %v1043_v52 }
0x142f   :  { %1044 = vrcp.f32 %v729_v53 }
0x1439   :  { %v1045_v54 = vpop.eup %1044 }
0x143a   :  { %v733_v7 = vmul.f32 %v1045_v54, %v670_v38 }
0x149d   :  { %v736_v56 = vpop.permute.xlu0 %735 }
0x149e   :  { %v738_v59 = vmul.f32 %v1045_v54, %v736_v56 }
0x14a0   :  { %740 = vrot.lane.b32.xlu1 %v738_v59, %s1052_s3 }
0x1512   :  { %v741_v57 = vpop.permute.xlu1 %740 }
0x1513   :  { %v743_v60 = vadd.f32 %v741_v57, %v733_v7 }
0x1515   :  { %1046 = vtanh.f32 %v743_v60 }
0x151f   :  { %v1047_v63 = vpop.eup %1046 }
0x1520   :  { %746 = vrot.lane.b32.xlu0 %v1047_v63, %s1051_s7 }
0x1592   :  { %v747_v1 = vpop.permute.xlu0 %746 }
0x1593   :  { %v749_v3 = vmul.f32 %v1045_v54, %v747_v1 }
0x1595   :  { %v750_v4 = vpack.c.bf16 %v749_v3, %v749_v3 }
0x1597   :  { %763 = vrot.lane.b32.xlu1 %v750_v4, %s1052_s3 }
0x1609   :  { %v764_v6 = vpop.permute.xlu1 %763 }
0x160a   :  { %967 = vmatmul.mubr.msk.bf16.vlgmr.msra.gmra.mrb[20].mxu0 %vm170_vm2, %v764_v6 }
0x16dd   :  { %v814_v10 = vpop.f32.mrb[20].mxu0 }
0x16de   :  { %v815_v12 = vadd.f32 %v852_v9, %v814_v10  ;;  %v968_v13 = vpop.f32.mrb[21].mxu0 }
0x16df   :  { %v817_v0 = vpop.f32.mrb[22].mxu0 }
0x16e0   :  { %820 = vst [vmem:[%s1258_s6] sm:$0xff] %v815_v12  ;;  %v969_v14 = vpop.f32.mrb[23].mxu0 }

</bundles_post_ra>
